<compile_context>
chip_gen: v7x
topology: tpu7x:2x2x1
jax: 0.10.0
libtpu: 0.0.40
codegen_flags: <defaults>
</compile_context>

<pallas_src>
import functools

import jax
import jax.numpy as jnp
from jax import lax
from jax.experimental import pallas as pl
from jax.experimental.pallas import tpu as pltpu


# ----------------------------- Pallas kernels --------------------------------


def _epilogue(acc, bg_ref, wt_ref, bt_ref, wf_ref, bf_ref, out_ref):
    """acc (TM, E) f32 = aggregated (A_hat @ X @ Wg^T) row tile -> logits row tile."""
    # GCNConv bias + ReLU (nn.Dropout is identity in eval mode).
    h = jnp.maximum(acc + bg_ref[...], 0.0)
    # TransformerLayer: the reference forward discards attn_output, so only its
    # Linear(embed_dim, embed_dim) contributes; ReLU afterwards.
    t = jnp.dot(h.astype(wt_ref.dtype), wt_ref[...],
                preferred_element_type=jnp.float32) + bt_ref[...]
    t = jnp.maximum(t, 0.0)
    # Final fc -> logits (output dim zero-padded to 128 lanes for unmasked stores).
    logits = jnp.dot(t.astype(wf_ref.dtype), wf_ref[...],
                     preferred_element_type=jnp.float32) + bf_ref[...]
    out_ref[...] = logits.astype(out_ref.dtype)


def _gt_kernel_single_k(a_ref, xw_ref, bg_ref, wt_ref, bt_ref, wf_ref, bf_ref, out_ref):
    """Whole aggregation row stripe resident: 1-D grid, no accumulator scratch."""
    acc = jnp.dot(a_ref[...], xw_ref[...], preferred_element_type=jnp.float32)
    _epilogue(acc, bg_ref, wt_ref, bt_ref, wf_ref, bf_ref, out_ref)


def _gt_kernel_multi_k(a_ref, xw_ref, bg_ref, wt_ref, bt_ref, wf_ref, bf_ref, out_ref,
                       acc_ref):
    """k-tiled aggregation with an f32 VMEM accumulator (reduction axis is last)."""
    k = pl.program_id(1)

    @pl.when(k == 0)
    def _():
        acc_ref[...] = jnp.zeros_like(acc_ref)

    acc_ref[...] += jnp.dot(a_ref[...], xw_ref[...], preferred_element_type=jnp.float32)

    @pl.when(k == pl.num_programs(1) - 1)
    def _():
        _epilogue(acc_ref[...], bg_ref, wt_ref, bt_ref, wf_ref, bf_ref, out_ref)


# ------------------------------ JAX wrapper ----------------------------------


def _round_up(n, m):
    return ((n + m - 1) // m) * m


def _vmem_budget_bytes():
    """Per-generation VMEM limit: ~3/4 of physical, capped at 96 MiB.

    v5e/v6e have 128 MiB physical VMEM (-> 96 MiB limit); v7x has 64 MiB (-> 48 MiB).
    """
    phys = 64 * 1024 * 1024  # conservative (v7x) fallback
    try:
        info = pltpu.get_tpu_info()
        phys = int(getattr(info, "vmem_capacity_bytes", phys))
    except Exception:
        pass
    return max(32 * 1024 * 1024, min(phys * 3 // 4, 96 * 1024 * 1024))


def _choose_tiles(n, vmem_limit, row_tile, max_k_tile):
    """Pick (tm, tk, n_pad): tm, tk multiples of 128 with tm | tk | n_pad."""
    n128 = _round_up(n, 128)
    # Row tile: start from row_tile; halve until the "parallel" row axis has >= 2 tiles
    # so both v7x TensorCores get work on small graphs (floor 128).
    tm = max(128, (row_tile // 128) * 128)
    while tm > 128 and n128 // tm < 2:
        tm //= 2
    tm = max(128, (tm // 128) * 128)
    # k tile: biggest A_hat stripe whose double-buffered bf16 block stays within ~1/4 of
    # the VMEM budget per buffer (leaves room for XW, weights, output and accumulator).
    a_buf_cap = vmem_limit // 4
    tk_cap = max(tm, (a_buf_cap // (tm * 2)) // 128 * 128)
    if max_k_tile is not None:
        tk_cap = max(tm, (max_k_tile // 128) * 128)
    if n128 <= tk_cap:
        # Full row stripe fits: drop the k grid axis entirely.
        n_pad = _round_up(n, tm)
        return tm, n_pad, n_pad
    tk = max(tm, (tk_cap // tm) * tm)   # tm divides tk
    n_pad = _round_up(n, tk)            # tk divides n_pad
    return tm, tk, n_pad


def build_gcn_adj(edge_index, num_nodes):
    """Dense A_hat = D^{-1/2} (A + I) D^{-1/2} as used by PyG GCNConv(normalize=True)."""
    # TODO(synk): for static graph topology, cache A_hat across calls (and build it directly
    # in the streaming dtype / int8+scale / block-sparse form) instead of re-scattering a
    # dense f32 matrix and casting every forward.
    src, dst = edge_index[0], edge_index[1]
    loop = jnp.arange(num_nodes, dtype=edge_index.dtype)
    src = jnp.concatenate([src, loop])
    dst = jnp.concatenate([dst, loop])
    w = jnp.ones(src.shape, jnp.float32)
    deg = jnp.zeros((num_nodes,), jnp.float32).at[dst].add(w)
    dinv = jnp.where(deg > 0, lax.rsqrt(deg), 0.0)
    norm = dinv[src] * w * dinv[dst]
    a = jnp.zeros((num_nodes, num_nodes), jnp.float32).at[dst, src].add(norm)
    return a


def _fused_call(a_hat, xw, bg, wt_t, bt, wf_t, bf, *, tm, tk, vmem_limit):
    n_pad, emb = xw.shape
    out_pad = wf_t.shape[1]

    if tk == n_pad:
        # Single-k path: whole row stripe of A_hat per grid step; no accumulator.
        grid = (n_pad // tm,)
        in_specs = [
            pl.BlockSpec((tm, n_pad), lambda i: (i, 0)),       # A_hat row stripe
            pl.BlockSpec((n_pad, emb), lambda i: (0, 0)),      # XW (VMEM resident)
            pl.BlockSpec((1, emb), lambda i: (0, 0)),          # bg
            pl.BlockSpec((emb, emb), lambda i: (0, 0)),        # Wt^T
            pl.BlockSpec((1, emb), lambda i: (0, 0)),          # bt
            pl.BlockSpec((emb, out_pad), lambda i: (0, 0)),    # Wf^T (lane-padded)
            pl.BlockSpec((1, out_pad), lambda i: (0, 0)),      # bf
        ]
        out_specs = pl.BlockSpec((tm, out_pad), lambda i: (i, 0))
        kernel = _gt_kernel_single_k
        scratch = []
        dims = ("parallel",)
    else:
        # Multi-k path: reduction axis last, f32 VMEM accumulator, deferred writeback.
        grid = (n_pad // tm, n_pad // tk)
        in_specs = [
            pl.BlockSpec((tm, tk), lambda i, k: (i, k)),       # A_hat tile
            pl.BlockSpec((tk, emb), lambda i, k: (k, 0)),      # XW tile
            pl.BlockSpec((1, emb), lambda i, k: (0, 0)),       # bg
            pl.BlockSpec((emb, emb), lambda i, k: (0, 0)),     # Wt^T
            pl.BlockSpec((1, emb), lambda i, k: (0, 0)),       # bt
            pl.BlockSpec((emb, out_pad), lambda i, k: (0, 0)), # Wf^T
            pl.BlockSpec((1, out_pad), lambda i, k: (0, 0)),   # bf
        ]
        out_specs = pl.BlockSpec((tm, out_pad), lambda i, k: (i, 0))
        kernel = _gt_kernel_multi_k
        scratch = [pltpu.VMEM((tm, emb), jnp.float32)]
        dims = ("parallel", "arbitrary")

    return pl.pallas_call(
        kernel,
        out_shape=jax.ShapeDtypeStruct((n_pad, out_pad), jnp.float32),
        grid_spec=pltpu.PrefetchScalarGridSpec(
            num_scalar_prefetch=0,
            grid=grid,
            in_specs=in_specs,
            out_specs=out_specs,
            scratch_shapes=scratch,
        ),
        compiler_params=pltpu.CompilerParams(
            dimension_semantics=dims,
            vmem_limit_bytes=vmem_limit,
        ),
    )(a_hat, xw, bg, wt_t, bt, wf_t, bf)


def graph_transformer_forward(params, x, edge_index, *, row_tile=512, max_k_tile=None):
    """Equivalent of GraphTransformer.forward(x, edge_index) in eval mode."""
    n, _ = x.shape
    emb = params["wg_t"].shape[1]
    out_dim = params["wf_t"].shape[1]

    # Dense sym-normalized adjacency, streamed as bf16.
    # TODO(synk): for large graphs, stream A_hat as int8(+scale) on v5e/v6e or fp8 on v7x
    # (halves the dominant HBM stream) and skip all-zero (tm, tk) tiles via scalar-prefetched
    # block indices (PrefetchScalarGridSpec) when the graph is block-sparse.
    a_hat = build_gcn_adj(edge_index, n).astype(jnp.bfloat16)

    # Fold the GCN weight into the streamed features: XW = X @ Wg^T  (N x E, bf16).
    # PyG GCNConv applies the linear before aggregation, so this matches its order exactly.
    xw = jnp.dot(x.astype(jnp.bfloat16), params["wg_t"].astype(jnp.bfloat16),
                 preferred_element_type=jnp.float32).astype(jnp.bfloat16)

    wt_t = params["wt_t"].astype(jnp.bfloat16)
    bg = params["bg"].astype(jnp.float32).reshape(1, emb)
    bt = params["bt"].astype(jnp.float32).reshape(1, emb)
    # Pad the lane-sparse output dim up to 128 so the final store is unmasked; slice after.
    out_pad = _round_up(max(out_dim, 128), 128)
    wf_t = jnp.zeros((emb, out_pad), jnp.bfloat16).at[:, :out_dim].set(
        params["wf_t"].astype(jnp.bfloat16))
    bf = jnp.zeros((1, out_pad), jnp.float32).at[:, :out_dim].set(
        params["bf"].astype(jnp.float32).reshape(1, out_dim))

    vmem_limit = _vmem_budget_bytes()
    tm, tk, n_pad = _choose_tiles(n, vmem_limit, row_tile, max_k_tile)

    # Pad N up to the tile multiple; padded rows/cols of A_hat are zero so they never
    # affect the real rows, and padded output rows are sliced off below.
    if n_pad != n:
        pad = n_pad - n
        a_hat = jnp.pad(a_hat, ((0, pad), (0, pad)))
        xw = jnp.pad(xw, ((0, pad), (0, 0)))

    logits = _fused_call(a_hat, xw, bg, wt_t, bt, wf_t, bf,
                         tm=tm, tk=tk, vmem_limit=vmem_limit)
    return logits[:n, :out_dim], None


# ------------------------------- main ----------------------------------------


if __name__ == "__main__":
    num_nodes = 256
    node_features = 16
    embed_dim = 64          # model_args.graph_transformer_emb[0]
    output_dim = 8

    key = jax.random.PRNGKey(0)
    kw0, kb0, kw1, kb1, kw2, kb2, kx, ke = jax.random.split(key, 8)

    # PyTorch (out, in) weights stored pre-transposed so every layer is x @ W^T + b.
    def init_linear(kw, kb, fan_in, fan_out, scale=0.1):
        w = jax.random.normal(kw, (fan_out, fan_in), jnp.float32) * scale
        b = jax.random.normal(kb, (fan_out,), jnp.float32) * 0.01
        return w.T, b.reshape(1, fan_out)

    wg_t, bg = init_linear(kw0, kb0, node_features, embed_dim)   # GCNConv
    wt_t, bt = init_linear(kw1, kb1, embed_dim, embed_dim)       # TransformerLayer.linear
    wf_t, bf = init_linear(kw2, kb2, embed_dim, output_dim)      # fc
    params = dict(wg_t=wg_t, bg=bg, wt_t=wt_t, bt=bt, wf_t=wf_t, bf=bf)

    # Node features + edge_index (ring in both directions + random extra edges).
    x = jax.random.normal(kx, (num_nodes, node_features), jnp.float32)
    ring = jnp.arange(num_nodes, dtype=jnp.int32)
    ring_next = (ring + 1) % num_nodes
    extra = jax.random.randint(ke, (2, 4 * num_nodes), 0, num_nodes, dtype=jnp.int32)
    src = jnp.concatenate([ring, ring_next, extra[0]])
    dst = jnp.concatenate([ring_next, ring, extra[1]])
    edge_index = jnp.stack([src, dst])

    # Pure-JAX reference with the same bf16-in / f32-accumulate numerics and PyG's
    # (X @ Wg^T) -> aggregate computation order.
    def reference(params, x, edge_index):
        n = x.shape[0]
        a = build_gcn_adj(edge_index, n).astype(jnp.bfloat16)
        xw = jnp.dot(x.astype(jnp.bfloat16), params["wg_t"].astype(jnp.bfloat16),
                     preferred_element_type=jnp.float32).astype(jnp.bfloat16)
        h = jnp.dot(a, xw, preferred_element_type=jnp.float32) + params["bg"]
        h = jnp.maximum(h, 0.0).astype(jnp.bfloat16)
        t = jnp.dot(h, params["wt_t"].astype(jnp.bfloat16),
                    preferred_element_type=jnp.float32) + params["bt"]
        t = jnp.maximum(t, 0.0).astype(jnp.bfloat16)
        return jnp.dot(t, params["wf_t"].astype(jnp.bfloat16),
                       preferred_element_type=jnp.float32) + params["bf"]

    ref = reference(params, x, edge_index)

    # Default path: full row stripe resident (1-D grid, no accumulator scratch).
    fwd = jax.jit(graph_transformer_forward)
    logits, aux = fwd(params, x, edge_index)
    jax.block_until_ready(logits)

    # Forced small k tile: exercises the multi-k accumulator variant as well.
    fwd_k = jax.jit(functools.partial(graph_transformer_forward,
                                      row_tile=128, max_k_tile=128))
    logits_k, _ = fwd_k(params, x, edge_index)
    jax.block_until_ready(logits_k)

    assert logits.shape == (num_nodes, output_dim)
    assert aux is None
    assert bool(jnp.all(jnp.isfinite(logits)))
    assert bool(jnp.allclose(logits, ref, atol=2e-2, rtol=2e-2))
    assert bool(jnp.allclose(logits_k, ref, atol=2e-2, rtol=2e-2))
    print("KERNEL_OK")
</pallas_src>

<mosaic_0001>
module attributes {stable_mosaic.version = 11 : i64} {
  func.func private @main(%arg0: i32) attributes {dimension_semantics = [#tpu.dimension_semantics<core_parallel>], iteration_bounds = array<i64: 2>, tpu.core_type = #tpu.core_type<sc_scalar_subcore>, window_params = []} {
    return
  }
}

module attributes {stable_mosaic.version = 11 : i64} {
  func.func private @main(%arg0: i32) attributes {dimension_semantics = [#tpu.dimension_semantics<core_parallel>], iteration_bounds = array<i64: 2>, tpu.core_type = #tpu.core_type<sc_scalar_subcore>, window_params = []} {
    return
  }
}

module attributes {stable_mosaic.version = 11 : i64} {
  func.func @_gt_kernel_single_k(%arg0: i32, %arg1: memref<128x256xbf16, #tpu.memory_space<vmem>>, %arg2: memref<256x64xbf16, #tpu.memory_space<vmem>>, %arg3: memref<1x64xf32, #tpu.memory_space<vmem>>, %arg4: memref<64x64xbf16, #tpu.memory_space<vmem>>, %arg5: memref<1x64xf32, #tpu.memory_space<vmem>>, %arg6: memref<64x128xbf16, #tpu.memory_space<vmem>>, %arg7: memref<1x128xf32, #tpu.memory_space<vmem>>, %arg8: memref<128x128xf32, #tpu.memory_space<vmem>>) attributes {dimension_semantics = [#tpu.dimension_semantics<parallel>], iteration_bounds = array<i64: 2>, scalar_prefetch = 0 : i64, scratch_operands = 0 : i64, tpu.core_type = #tpu.core_type<tc>, window_params = [{transform_indices = @transform_0, window_bounds = array<i64: 128, 256>}, {pipeline_mode = #tpu.pipeline_mode<synchronous>, transform_indices = @transform_1, window_bounds = array<i64: 256, 64>}, {pipeline_mode = #tpu.pipeline_mode<synchronous>, transform_indices = @transform_2, window_bounds = array<i64: 1, 64>}, {pipeline_mode = #tpu.pipeline_mode<synchronous>, transform_indices = @transform_3, window_bounds = array<i64: 64, 64>}, {pipeline_mode = #tpu.pipeline_mode<synchronous>, transform_indices = @transform_4, window_bounds = array<i64: 1, 64>}, {pipeline_mode = #tpu.pipeline_mode<synchronous>, transform_indices = @transform_5, window_bounds = array<i64: 64, 128>}, {pipeline_mode = #tpu.pipeline_mode<synchronous>, transform_indices = @transform_6, window_bounds = array<i64: 1, 128>}, {transform_indices = @transform_7, window_bounds = array<i64: 128, 128>}]} {
    %c0 = arith.constant 0 : index
    %c0_0 = arith.constant 0 : index
    %0 = vector.load %arg1[%c0, %c0_0] : memref<128x256xbf16, #tpu.memory_space<vmem>>, vector<128x256xbf16>
    %c0_1 = arith.constant 0 : index
    %c0_2 = arith.constant 0 : index
    %1 = vector.load %arg2[%c0_1, %c0_2] : memref<256x64xbf16, #tpu.memory_space<vmem>>, vector<256x64xbf16>
    %cst = arith.constant dense<0.000000e+00> : vector<128x64xf32>
    %2 = tpu.matmul %0, %1, %cst {dimension_numbers = #tpu.dot_dimension_numbers<[1], [0], [0], [1], [0, 0, 1, 1], [], []>} : vector<128x256xbf16>, vector<256x64xbf16>, vector<128x64xf32> -> vector<128x64xf32>
    %c0_3 = arith.constant 0 : index
    %c0_4 = arith.constant 0 : index
    %3 = vector.load %arg3[%c0_3, %c0_4] : memref<1x64xf32, #tpu.memory_space<vmem>>, vector<1x64xf32>
    %4 = vector.broadcast %3 : vector<1x64xf32> to vector<128x64xf32>
    %5 = arith.addf %2, %4 : vector<128x64xf32>
    %cst_5 = arith.constant 0.000000e+00 : f32
    %6 = vector.broadcast %cst_5 : f32 to vector<128x64xf32>
    %7 = arith.maximumf %5, %6 : vector<128x64xf32>
    %8 = arith.truncf %7 : vector<128x64xf32> to vector<128x64xbf16>
    %c0_6 = arith.constant 0 : index
    %c0_7 = arith.constant 0 : index
    %9 = vector.load %arg4[%c0_6, %c0_7] : memref<64x64xbf16, #tpu.memory_space<vmem>>, vector<64x64xbf16>
    %cst_8 = arith.constant dense<0.000000e+00> : vector<128x64xf32>
    %10 = tpu.matmul %8, %9, %cst_8 {dimension_numbers = #tpu.dot_dimension_numbers<[1], [0], [0], [1], [0, 0, 1, 1], [], []>} : vector<128x64xbf16>, vector<64x64xbf16>, vector<128x64xf32> -> vector<128x64xf32>
    %c0_9 = arith.constant 0 : index
    %c0_10 = arith.constant 0 : index
    %11 = vector.load %arg5[%c0_9, %c0_10] : memref<1x64xf32, #tpu.memory_space<vmem>>, vector<1x64xf32>
    %12 = vector.broadcast %11 : vector<1x64xf32> to vector<128x64xf32>
    %13 = arith.addf %10, %12 : vector<128x64xf32>
    %cst_11 = arith.constant 0.000000e+00 : f32
    %14 = vector.broadcast %cst_11 : f32 to vector<128x64xf32>
    %15 = arith.maximumf %13, %14 : vector<128x64xf32>
    %16 = arith.truncf %15 : vector<128x64xf32> to vector<128x64xbf16>
    %c0_12 = arith.constant 0 : index
    %c0_13 = arith.constant 0 : index
    %17 = vector.load %arg6[%c0_12, %c0_13] : memref<64x128xbf16, #tpu.memory_space<vmem>>, vector<64x128xbf16>
    %cst_14 = arith.constant dense<0.000000e+00> : vector<128x128xf32>
    %18 = tpu.matmul %16, %17, %cst_14 {dimension_numbers = #tpu.dot_dimension_numbers<[1], [0], [0], [1], [0, 0, 1, 1], [], []>} : vector<128x64xbf16>, vector<64x128xbf16>, vector<128x128xf32> -> vector<128x128xf32>
    %c0_15 = arith.constant 0 : index
    %c0_16 = arith.constant 0 : index
    %19 = vector.load %arg7[%c0_15, %c0_16] : memref<1x128xf32, #tpu.memory_space<vmem>>, vector<1x128xf32>
    %20 = vector.broadcast %19 : vector<1x128xf32> to vector<128x128xf32>
    %21 = arith.addf %18, %20 : vector<128x128xf32>
    %c0_17 = arith.constant 0 : index
    %c0_18 = arith.constant 0 : index
    %22 = vector.load %arg8[%c0_17, %c0_18] : memref<128x128xf32, #tpu.memory_space<vmem>>, vector<128x128xf32>
    tpu.vector_store %arg8[%c0_17, %c0_18], %21 {strides = array<i32>} : memref<128x128xf32, #tpu.memory_space<vmem>>, vector<128x128xf32>,
    return
  }
  func.func @transform_0(%arg0: i32) -> (i32, i32) {
    %c0_i32 = arith.constant 0 : i32
    %c0_i32_0 = arith.constant 0 : i32
    return %arg0, %c0_i32 : i32, i32
  }
  func.func @transform_1(%arg0: i32) -> (i32, i32) {
    %c0_i32 = arith.constant 0 : i32
    %c0_i32_0 = arith.constant 0 : i32
    %c0_i32_1 = arith.constant 0 : i32
    return %c0_i32, %c0_i32_0 : i32, i32
  }
  func.func @transform_2(%arg0: i32) -> (i32, i32) {
    %c0_i32 = arith.constant 0 : i32
    %c0_i32_0 = arith.constant 0 : i32
    %c0_i32_1 = arith.constant 0 : i32
    return %c0_i32, %c0_i32_0 : i32, i32
  }
  func.func @transform_3(%arg0: i32) -> (i32, i32) {
    %c0_i32 = arith.constant 0 : i32
    %c0_i32_0 = arith.constant 0 : i32
    %c0_i32_1 = arith.constant 0 : i32
    return %c0_i32, %c0_i32_0 : i32, i32
  }
  func.func @transform_4(%arg0: i32) -> (i32, i32) {
    %c0_i32 = arith.constant 0 : i32
    %c0_i32_0 = arith.constant 0 : i32
    %c0_i32_1 = arith.constant 0 : i32
    return %c0_i32, %c0_i32_0 : i32, i32
  }
  func.func @transform_5(%arg0: i32) -> (i32, i32) {
    %c0_i32 = arith.constant 0 : i32
    %c0_i32_0 = arith.constant 0 : i32
    %c0_i32_1 = arith.constant 0 : i32
    return %c0_i32, %c0_i32_0 : i32, i32
  }
  func.func @transform_6(%arg0: i32) -> (i32, i32) {
    %c0_i32 = arith.constant 0 : i32
    %c0_i32_0 = arith.constant 0 : i32
    %c0_i32_1 = arith.constant 0 : i32
    return %c0_i32, %c0_i32_0 : i32, i32
  }
  func.func @transform_7(%arg0: i32) -> (i32, i32) {
    %c0_i32 = arith.constant 0 : i32
    %c0_i32_0 = arith.constant 0 : i32
    return %arg0, %c0_i32 : i32, i32
  }
}

</mosaic_0001>

<bundles_post_ra>
// kernel: mul.1
= control target key start
LH: loop header
LB: loop body
LE: loop exit
PB: predicated region body
PF: predicated region fallthrough
CT: control target
= control target key end

     0   :  { %s56_s0 = inlined_call_operand.vmem [shape: f32[1792], index: 0, kind: input, shape index: {}]   ;;  %s57_s1 = inlined_call_operand.vmem [shape: f32[1792], index: 1, kind: input, shape index: {}]   ;;  %s58_s2 = inlined_call_operand.vmem [shape: f32[1792], index: 2, kind: output, shape index: {}]  }
   0x1   :  { %v3_v0 = vld [vmem:[%s56_s0] sm:$0xff]  ;;  %v20_v2 = vld [vmem:[%s56_s0 + $0x8] sm:$0xff] }
   0x2   :  { %v4_v1 = vld [vmem:[%s57_s1] sm:$0xff]  ;;  %v21_v4 = vld [vmem:[%s57_s1 + $0x8] sm:$0xff] }
   0x3   :  { %v7_v3 = vmul.f32 %v4_v1, %v3_v0  ;;  %v16_v5 = vmul.f32 %v21_v4, %v20_v2 }
   0x5   :  { %9 = vst [vmem:[%s58_s2] sm:$0xff] %v7_v3  ;;  %22 = vst [vmem:[%s58_s2 + $0x8] sm:$0xff] %v16_v5 }

// kernel: graph_transformer_forward.1
= control target key start
LH: loop header
LB: loop body
LE: loop exit
PB: predicated region body
PF: predicated region fallthrough
CT: control target
= control target key end

     0   :  { %s1367_s24 = smov 0   ;;  %s1542_s0 = inlined_call_operand.vmem [shape: bf16[256,256], index: 0, kind: input, shape index: {}]   ;;  %s1543_s1 = inlined_call_operand.vmem [shape: bf16[256,64], index: 1, kind: input, shape index: {}]   ;;  %s1544_s2 = inlined_call_operand.vmem [shape: f32[1,64], index: 2, kind: input, shape index: {}]   ;;  %s1545_s3 = inlined_call_operand.vmem [shape: bf16[64,64], index: 3, kind: input, shape index: {}]   ;;  %s1546_s4 = inlined_call_operand.vmem [shape: f32[1,64], index: 4, kind: input, shape index: {}]   ;;  %s1547_s5 = inlined_call_operand.vmem [shape: bf16[64,128], index: 5, kind: input, shape index: {}]   ;;  %s1548_s6 = inlined_call_operand.vmem [shape: f32[1,128], index: 6, kind: input, shape index: {}]   ;;  %s1549_s7 = inlined_call_operand.vmem [shape: f32[256,128], index: 7, kind: output, shape index: {}]  }
   0x1 LB: > { %s1055_s25 = sadd.s32 4294967295, %s1325_s24   ;;  %p1059_p0 = scmp.ge.s32.totalorder %s1325_s24, 1  ;;  %s1325_s24 = sphi %s1367_s24, %s17_s24  }
   0x2   : > { %p239_p1 = scmp.lt.s32.totalorder %s1325_s24, 3 }
   0x4   : > { %p240_p2 = pnand %p1059_p0, %p239_p1 }
   0x5   : > { %v1271_v0 = vld [vmem:[%s1543_s1 + $0x40] sm:$0xff] (!%p240_p2)   ;;  %s1060_s28 = sshll.u32 (!%p240_p2), %s1055_s25, 4  ;;  %v1273_v2 = vld [vmem:[%s1543_s1 + $0x48] sm:$0xff] (!%p240_p2)   ;;  %v1275_v4 = vld [vmem:[%s1543_s1 + $0x50] sm:$0xff] (!%p240_p2)   ;;  %vm677_vm0 = vcmask (!%p240_p2), 523264  }
   0x6   : > { %243 = sbr.rel (%p240_p2) target bundleno = 757 (0x2f5), region = 48  ;;  %v1272_v1 = vld [vmem:[%s1543_s1] sm:$0xff] (!%p240_p2)   ;;  %1127 = vmatprep.subr.bf16.mxu0 (!%p240_p2), %v1271_v0  ;;  %v1274_v3 = vld [vmem:[%s1543_s1 + $0x8] sm:$0xff] (!%p240_p2)   ;;  %p273_p3 = scmp.lt.s32.totalorder (!%p240_p2), %s1060_s28, 31  ;;  %v1276_v5 = vld [vmem:[%s1543_s1 + $0x10] sm:$0xff] (!%p240_p2)  }
   0x7   : > { %1128 = vmatpush3.bf16.msra.mxu0 (!%p240_p2), %v1272_v1  ;;  %v1277_v6 = vld [vmem:[%s1543_s1 + $0x58] sm:$0xff] (!%p240_p2)   ;;  %v1279_v8 = vld [vmem:[%s1543_s1 + $0x60] sm:$0xff] (!%p240_p2)   ;;  %v1281_v10 = vld [vmem:[%s1543_s1 + $0x68] sm:$0xff] (!%p240_p2)  }
   0x8   : > { %1129 = vmatprep.subr.bf16.mxu0 (!%p240_p2), %v1273_v2  ;;  %v1278_v7 = vld [vmem:[%s1543_s1 + $0x18] sm:$0xff] (!%p240_p2)   ;;  %v1280_v9 = vld [vmem:[%s1543_s1 + $0x20] sm:$0xff] (!%p240_p2)   ;;  %v1282_v12 = vld [vmem:[%s1543_s1 + $0x28] sm:$0xff] (!%p240_p2)  }
   0x9   : > { %v1283_v13 = vld [vmem:[%s1543_s1 + $0x70] sm:$0xff] (!%p240_p2)   ;;  %v1285_v15 = vld [vmem:[%s1543_s1 + $0x78] sm:$0xff] (!%p240_p2)   ;;  %v1311_v32 = vld [vmem:[%s1545_s3] sm:$0xff] (!%p240_p2)  }
   0xa   : > { %v1284_v14 = vld [vmem:[%s1543_s1 + $0x30] sm:$0xff] (!%p240_p2)   ;;  %v1286_v16 = vld [vmem:[%s1543_s1 + $0x38] sm:$0xff] (!%p240_p2)   ;;  %1215 = vmatprep.subr.bf16.mxu1 (!%p240_p2), %v1311_v32  ;;  %v1312_v33 = vld [vmem:[%s1545_s3 + $0x8] sm:$0xff] (!%p240_p2)  }
   0xb   : > { %1130 = vmatpush3.bf16.msra.mxu0 (!%p240_p2), %v1274_v3  ;;  %1216 = vmatpush3.bf16.msra.mxu1 (!%p240_p2), %v1311_v32  ;;  %v1313_v34 = vld [vmem:[%s1545_s3 + $0x10] sm:$0xff] (!%p240_p2)   ;;  %v1314_v35 = vld [vmem:[%s1545_s3 + $0x18] sm:$0xff] (!%p240_p2)   ;;  %v1315_v36 = vld [vmem:[%s1547_s5] sm:$0xff] (!%p240_p2)  }
   0xc   : > { %1131 = vmatprep.subr.bf16.mxu0 (!%p240_p2), %v1275_v4  ;;  %1217 = vmatprep.subr.bf16.mxu1 (!%p240_p2), %v1312_v33  ;;  %v1467_v38 = vld [vmem:[%s1544_s2] ss:$0 sm:$0xff] (!%p240_p2)  ;;  %v1316_v0 = vld [vmem:[%s1547_s5 + $0x8] sm:$0xff] (!%p240_p2)  }
   0xd   : > { %s1551_s28 = smov (!%p273_p3, %s1060_s28), 31 }
   0xe   : > { %s1126_s20 = sshll.u32 %s1551_s28, 3 }
   0xf   : > { %1132 = vmatpush3.bf16.msra.mxu0 %v1276_v5  ;;  %s1410_s26 = scalar_lea.vmem %s1542_s0, %s1126_s20  ;;  %1218 = vmatpush3.bf16.msra.mxu1 %v1312_v33  ;;  %s1521_s25 = scalar_lea.vmem %s1549_s7, %s1126_s20 }
  0x10   : > { %1133 = vmatprep.subr.bf16.mxu0 %v1277_v6  ;;  %v1289_v11 = vld [vmem:[%s1410_s26 + $0x4] ss:$8 sps:$4 sm:$0xff]   ;;  %v1287_v17 = vld [vmem:[%s1410_s26] ss:$8 sps:$4 sm:$0xff]   ;;  %v1290_v18 = vld [vmem:[%s1410_s26 + $0x14] ss:$8 sps:$4 sm:$0xff]   ;;  %1219 = vmatprep.subr.bf16.mxu1 %v1313_v34 }
  0x11   : > { %549 = vmatprep.mubr.bf16.mxu0 %v1289_v11  ;;  %v1292_v19 = vld [vmem:[%s1410_s26 + $0x10] ss:$8 sps:$4 sm:$0xff]   ;;  %v1293_v20 = vld [vmem:[%s1410_s26 + $0x24] ss:$8 sps:$4 sm:$0xff]   ;;  %v1295_v21 = vld [vmem:[%s1410_s26 + $0x20] ss:$8 sps:$4 sm:$0xff]  }
  0x12   : > { %v1296_v22 = vld [vmem:[%s1410_s26 + $0x34] ss:$8 sps:$4 sm:$0xff]   ;;  %v1298_v23 = vld [vmem:[%s1410_s26 + $0x30] ss:$8 sps:$4 sm:$0xff]   ;;  %v1299_v24 = vld [vmem:[%s1410_s26 + $0x44] ss:$8 sps:$4 sm:$0xff]  }
  0x13   : > { %1134 = vmatpush3.bf16.msra.mxu0 %v1278_v7  ;;  %v1301_v25 = vld [vmem:[%s1410_s26 + $0x40] ss:$8 sps:$4 sm:$0xff]   ;;  %v1302_v26 = vld [vmem:[%s1410_s26 + $0x54] ss:$8 sps:$4 sm:$0xff]   ;;  %v1304_v27 = vld [vmem:[%s1410_s26 + $0x50] ss:$8 sps:$4 sm:$0xff]   ;;  %1220 = vmatpush3.bf16.msra.mxu1 %v1313_v34 }
  0x14   : > { %1135 = vmatprep.subr.bf16.mxu0 %v1279_v8  ;;  %v1305_v28 = vld [vmem:[%s1410_s26 + $0x64] ss:$8 sps:$4 sm:$0xff]   ;;  %v1307_v29 = vld [vmem:[%s1410_s26 + $0x60] ss:$8 sps:$4 sm:$0xff]   ;;  %v1308_v30 = vld [vmem:[%s1410_s26 + $0x74] ss:$8 sps:$4 sm:$0xff]   ;;  %1221 = vmatprep.subr.bf16.mxu1 %v1314_v35 }
  0x15   : > { %v1310_v31 = vld [vmem:[%s1410_s26 + $0x70] ss:$8 sps:$4 sm:$0xff]  }
  0x17   : > { %1136 = vmatpush3.bf16.msra.mxu0 %v1280_v9  ;;  %1222 = vmatpush3.bf16.msra.mxu1 %v1314_v35 }
  0x18   : > { %1137 = vmatprep.subr.bf16.mxu0 %v1281_v10  ;;  %1239 = vmatprep.subr.bf16.mxu1 %v1315_v36 }
  0x1b   : > { %1138 = vmatpush3.bf16.msra.mxu0 %v1282_v12 }
  0x1c   : > { %1139 = vmatprep.subr.bf16.mxu0 %v1283_v13 }
  0x1f   : > { %1140 = vmatpush3.bf16.msra.mxu0 %v1284_v14 }
  0x20   : > { %1141 = vmatprep.subr.bf16.mxu0 %v1285_v15 }
  0x23   : > { %1142 = vmatpush3.bf16.msra.mxu0 %v1286_v16 }
  0x26   : > { %550 = vmatmul.mubr.bf16.vlgmr.msra.gmra.mrb[0].mxu0 %v1287_v17 }
  0x27   : > { %557 = vmatprep.mubr.bf16.mxu0 %v1290_v18 }
  0x2e   : > { %558 = vmatmul.mubr.bf16.gmra.mrb[4].mxu0 %v1292_v19 }
  0x2f   : > { %565 = vmatprep.mubr.bf16.mxu0 %v1293_v20 }
  0x36   : > { %566 = vmatmul.mubr.bf16.gmra.mrb[8].mxu0 %v1295_v21 }
  0x37   : > { %573 = vmatprep.mubr.bf16.mxu0 %v1296_v22 }
  0x3e   : > { %574 = vmatmul.mubr.bf16.gmra.mrb[12].mxu0 %v1298_v23 }
  0x3f   : > { %581 = vmatprep.mubr.bf16.mxu0 %v1299_v24 }
  0x46   : > { %582 = vmatmul.mubr.bf16.gmra.mrb[16].mxu0 %v1301_v25 }
  0x47   : > { %589 = vmatprep.mubr.bf16.mxu0 %v1302_v26 }
  0x4e   : > { %590 = vmatmul.mubr.bf16.gmra.mrb[20].mxu0 %v1304_v27 }
  0x4f   : > { %597 = vmatprep.mubr.bf16.mxu0 %v1305_v28 }
  0x56   : > { %598 = vmatmul.mubr.bf16.gmra.mrb[24].mxu0 %v1307_v29 }
  0x57   : > { %605 = vmatprep.mubr.bf16.mxu0 %v1308_v30 }
  0x5e   : > { %606 = vmatmul.mubr.bf16.gmra.mrb[28].mxu0 %v1310_v31 }
  0xf9   : > { %v1143_v37 = vpop.f32.mrb[0].mxu0 }
  0xfa   : > { %v1144_v39 = vpop.f32.mrb[1].mxu0 }
  0xfb   : > { %v1145_v40 = vadd.f32 %v1144_v39, %v1143_v37  ;;  %v1146_v41 = vpop.f32.mrb[2].mxu0 }
  0xfc   : > { %v1147_v42 = vpop.f32.mrb[3].mxu0 }
  0xfd   : > { %v552_v43 = vadd.f32 %v1145_v40, %v1467_v38  ;;  %v1148_v44 = vadd.f32 %v1147_v42, %v1146_v41 }
  0xff   : > { %v555_v45 = vadd.f32 %v1148_v44, %v1467_v38  ;;  %v614_v46 = vmax.f32 %v552_v43, 0.0 }
 0x101   : > { %v615_v47 = vmax.f32 %v555_v45, 0.0  ;;  %v1149_v48 = vpop.f32.mrb[4].mxu0 }
 0x102   : > { %v1150_v49 = vpop.f32.mrb[5].mxu0 }
 0x103   : > { %v1151_v50 = vadd.f32 %v1150_v49, %v1149_v48  ;;  %v1152_v51 = vpop.f32.mrb[6].mxu0  ;;  %v630_v52 = vpack.c.bf16 %v615_v47, %v614_v46 }
 0x104   : > { %v1153_v53 = vpop.f32.mrb[7].mxu0 }
 0x105   : > { %v560_v54 = vadd.f32 %v1151_v50, %v1467_v38  ;;  %v1154_v55 = vadd.f32 %v1153_v53, %v1152_v51  ;;  %1223 = vmatprep.mubr.msk.bf16.mxu1 %vm677_vm0, %v630_v52 }
 0x107   : > { %v563_v56 = vadd.f32 %v1154_v55, %v1467_v38  ;;  %v616_v57 = vmax.f32 %v560_v54, 0.0 }
 0x109   : > { %v617_v58 = vmax.f32 %v563_v56, 0.0  ;;  %v1155_v59 = vpop.f32.mrb[8].mxu0 }
 0x10a   : > { %v1156_v60 = vpop.f32.mrb[9].mxu0 }
 0x10b   : > { %v631_v61 = vpack.c.bf16 %v617_v58, %v616_v57  ;;  %v1157_v62 = vadd.f32 %v1156_v60, %v1155_v59  ;;  %v1158_v63 = vpop.f32.mrb[10].mxu0 }
 0x10c   : > { %v1159_v1 = vpop.f32.mrb[11].mxu0 }
 0x10d   : > { %v568_v2 = vadd.f32 %v1157_v62, %v1467_v38  ;;  %v1160_v3 = vadd.f32 %v1159_v1, %v1158_v63  ;;  %1224 = vmatmul.mubr.msk.bf16.vlgmr.msra.gmra.mrb[0].mxu1 %vm677_vm0, %v631_v61  ;;  %v1318_v1 = vld [vmem:[%s1547_s5 + $0x18] sm:$0xff]  }
 0x10e   : > { %1240 = vmatpush3.bf16.msra.mxu1 %v1315_v36 }
 0x10f   : > { %v571_v4 = vadd.f32 %v1160_v3, %v1467_v38  ;;  %1241 = vmatprep.subr.bf16.mxu1 %v1316_v0  ;;  %v618_v5 = vmax.f32 %v568_v2, 0.0 }
 0x111   : > { %v619_v6 = vmax.f32 %v571_v4, 0.0  ;;  %v1161_v7 = vpop.f32.mrb[12].mxu0 }
 0x112   : > { %v1162_v8 = vpop.f32.mrb[13].mxu0  ;;  %1242 = vmatpush3.bf16.msra.mxu1 %v1316_v0  ;;  %v1317_v0 = vld [vmem:[%s1547_s5 + $0x10] sm:$0xff]  }
 0x113   : > { %v632_v9 = vpack.c.bf16 %v619_v6, %v618_v5  ;;  %v1163_v10 = vadd.f32 %v1162_v8, %v1161_v7  ;;  %v1164_v11 = vpop.f32.mrb[14].mxu0  ;;  %1243 = vmatprep.subr.bf16.mxu1 %v1317_v0 }
 0x114   : > { %v1165_v12 = vpop.f32.mrb[15].mxu0 }
 0x115   : > { %v576_v13 = vadd.f32 %v1163_v10, %v1467_v38  ;;  %v1166_v14 = vadd.f32 %v1165_v12, %v1164_v11  ;;  %1227 = vmatprep.mubr.msk.bf16.mxu1 %vm677_vm0, %v632_v9 }
 0x116   : > { %1244 = vmatpush3.bf16.msra.mxu1 %v1317_v0 }
 0x117   : > { %v579_v15 = vadd.f32 %v1166_v14, %v1467_v38  ;;  %v620_v16 = vmax.f32 %v576_v13, 0.0  ;;  %1245 = vmatprep.subr.bf16.mxu1 %v1318_v1 }
 0x119   : > { %v621_v17 = vmax.f32 %v579_v15, 0.0  ;;  %v1167_v18 = vpop.f32.mrb[16].mxu0 }
 0x11a   : > { %v1168_v19 = vpop.f32.mrb[17].mxu0  ;;  %1246 = vmatpush3.bf16.msra.mxu1 %v1318_v1 }
 0x11b   : > { %v633_v20 = vpack.c.bf16 %v621_v17, %v620_v16  ;;  %v1169_v21 = vadd.f32 %v1168_v19, %v1167_v18  ;;  %v1170_v22 = vpop.f32.mrb[18].mxu0 }
 0x11c   : > { %v1171_v23 = vpop.f32.mrb[19].mxu0 }
 0x11d   : > { %v584_v24 = vadd.f32 %v1169_v21, %v1467_v38  ;;  %v1172_v25 = vadd.f32 %v1171_v23, %v1170_v22  ;;  %1228 = vmatmul.mubr.msk.bf16.gmra.mrb[4].mxu1 %vm677_vm0, %v633_v20 }
 0x11f   : > { %v587_v26 = vadd.f32 %v1172_v25, %v1467_v38  ;;  %v622_v27 = vmax.f32 %v584_v24, 0.0 }
 0x121   : > { %v623_v28 = vmax.f32 %v587_v26, 0.0  ;;  %v1173_v29 = vpop.f32.mrb[20].mxu0 }
 0x122   : > { %v1174_v30 = vpop.f32.mrb[21].mxu0 }
 0x123   : > { %v634_v31 = vpack.c.bf16 %v623_v28, %v622_v27  ;;  %v1175_v32 = vadd.f32 %v1174_v30, %v1173_v29  ;;  %v1176_v33 = vpop.f32.mrb[22].mxu0 }
 0x124   : > { %v1177_v34 = vpop.f32.mrb[23].mxu0 }
 0x125   : > { %v592_v35 = vadd.f32 %v1175_v32, %v1467_v38  ;;  %v1178_v36 = vadd.f32 %v1177_v34, %v1176_v33  ;;  %1231 = vmatprep.mubr.msk.bf16.mxu1 %vm677_vm0, %v634_v31 }
 0x127   : > { %v595_v37 = vadd.f32 %v1178_v36, %v1467_v38  ;;  %v624_v39 = vmax.f32 %v592_v35, 0.0 }
 0x129   : > { %v625_v40 = vmax.f32 %v595_v37, 0.0  ;;  %v1179_v41 = vpop.f32.mrb[24].mxu0 }
 0x12a   : > { %v1180_v42 = vpop.f32.mrb[25].mxu0 }
 0x12b   : > { %v635_v43 = vpack.c.bf16 %v625_v40, %v624_v39  ;;  %v1181_v44 = vadd.f32 %v1180_v42, %v1179_v41  ;;  %v1182_v45 = vpop.f32.mrb[26].mxu0 }
 0x12c   : > { %v1183_v46 = vpop.f32.mrb[27].mxu0 }
 0x12d   : > { %v600_v47 = vadd.f32 %v1181_v44, %v1467_v38  ;;  %v1184_v48 = vadd.f32 %v1183_v46, %v1182_v45  ;;  %1232 = vmatmul.mubr.msk.bf16.gmra.mrb[8].mxu1 %vm677_vm0, %v635_v43 }
 0x12f   : > { %v603_v49 = vadd.f32 %v1184_v48, %v1467_v38  ;;  %v626_v50 = vmax.f32 %v600_v47, 0.0 }
 0x131   : > { %v627_v51 = vmax.f32 %v603_v49, 0.0  ;;  %v1185_v52 = vpop.f32.mrb[28].mxu0 }
 0x132   : > { %v1186_v53 = vpop.f32.mrb[29].mxu0 }
 0x133   : > { %v636_v54 = vpack.c.bf16 %v627_v51, %v626_v50  ;;  %v1187_v55 = vadd.f32 %v1186_v53, %v1185_v52  ;;  %v1188_v56 = vpop.f32.mrb[30].mxu0 }
 0x134   : > { %v1189_v57 = vpop.f32.mrb[31].mxu0 }
 0x135   : > { %v608_v58 = vadd.f32 %v1187_v55, %v1467_v38  ;;  %v1190_v59 = vadd.f32 %v1189_v57, %v1188_v56  ;;  %1235 = vmatprep.mubr.msk.bf16.mxu1 %vm677_vm0, %v636_v54 }
 0x137   : > { %v611_v60 = vadd.f32 %v1190_v59, %v1467_v38  ;;  %v628_v61 = vmax.f32 %v608_v58, 0.0  ;;  %v1098_v38 = vld [vmem:[%s1546_s4] ss:$0 sm:$0xff] }
 0x138   : > { %v1111_v59 = vld [vmem:[%s1548_s6] ss:$0 sm:$0xff] }
 0x139   : > { %v629_v62 = vmax.f32 %v611_v60, 0.0 }
 0x13b   : > { %v637_v63 = vpack.c.bf16 %v629_v62, %v628_v61 }
 0x13d   : > { %1236 = vmatmul.mubr.msk.bf16.gmra.mrb[12].mxu1 %vm677_vm0, %v637_v63 }
 0x1e0   : > { %v1225_v2 = vpop.f32.mrb[0].mxu1 }
 0x1e1   : > { %v745_v3 = vadd.f32 %v1225_v2, %v1098_v38  ;;  %v736_v4 = vpop.f32.mrb[1].mxu1 }
 0x1e2   : > { %v737_v5 = vadd.f32 %v1098_v38, %v736_v4  ;;  %v1226_v6 = vpop.f32.mrb[2].mxu1 }
 0x1e3   : > { %v748_v7 = vadd.f32 %v1226_v6, %v1098_v38  ;;  %v739_v8 = vpop.f32.mrb[3].mxu1  ;;  %v801_v10 = vmax.f32 %v745_v3, 0.0 }
 0x1e4   : > { %v740_v9 = vadd.f32 %v1098_v38, %v739_v8  ;;  %v799_v12 = vmax.f32 %v737_v5, 0.0 }
 0x1e5   : > { %v802_v11 = vmax.f32 %v748_v7, 0.0 }
 0x1e6   : > { %v800_v13 = vmax.f32 %v740_v9, 0.0 }
 0x1e7   : > { %v816_v14 = vpack.c.bf16 %v802_v11, %v801_v10 }
 0x1e8   : > { %v815_v15 = vpack.c.bf16 %v800_v13, %v799_v12 }
 0x1ea   : > { %1247 = vmatprep.mubr.msk.bf16.mxu1 %vm677_vm0, %v815_v15 }
 0x1eb   : > { %1248 = vmatmul.mubr.msk.bf16.vlgmr.msra.gmra.mrb[16].mxu1 %vm677_vm0, %v816_v14 }
 0x1f0   : > { %v1229_v16 = vpop.f32.mrb[4].mxu1 }
 0x1f1   : > { %v761_v17 = vadd.f32 %v1229_v16, %v1098_v38  ;;  %v752_v18 = vpop.f32.mrb[5].mxu1 }
 0x1f2   : > { %v753_v19 = vadd.f32 %v1098_v38, %v752_v18  ;;  %v1230_v20 = vpop.f32.mrb[6].mxu1 }
 0x1f3   : > { %v764_v21 = vadd.f32 %v1230_v20, %v1098_v38  ;;  %v755_v22 = vpop.f32.mrb[7].mxu1  ;;  %v805_v24 = vmax.f32 %v761_v17, 0.0 }
 0x1f4   : > { %v756_v23 = vadd.f32 %v1098_v38, %v755_v22  ;;  %v803_v26 = vmax.f32 %v753_v19, 0.0 }
 0x1f5   : > { %v806_v25 = vmax.f32 %v764_v21, 0.0 }
 0x1f6   : > { %v804_v27 = vmax.f32 %v756_v23, 0.0 }
 0x1f7   : > { %v818_v28 = vpack.c.bf16 %v806_v25, %v805_v24 }
 0x1f8   : > { %v817_v29 = vpack.c.bf16 %v804_v27, %v803_v26 }
 0x1fa   : > { %1251 = vmatprep.mubr.msk.bf16.mxu1 %vm677_vm0, %v817_v29 }
 0x1fb   : > { %1252 = vmatmul.mubr.msk.bf16.gmra.mrb[20].mxu1 %vm677_vm0, %v818_v28 }
 0x200   : > { %v1233_v30 = vpop.f32.mrb[8].mxu1 }
 0x201   : > { %v777_v31 = vadd.f32 %v1233_v30, %v1098_v38  ;;  %v768_v32 = vpop.f32.mrb[9].mxu1 }
 0x202   : > { %v769_v33 = vadd.f32 %v1098_v38, %v768_v32  ;;  %v1234_v34 = vpop.f32.mrb[10].mxu1 }
 0x203   : > { %v780_v35 = vadd.f32 %v1234_v34, %v1098_v38  ;;  %v771_v36 = vpop.f32.mrb[11].mxu1  ;;  %v809_v39 = vmax.f32 %v777_v31, 0.0 }
 0x204   : > { %v772_v37 = vadd.f32 %v1098_v38, %v771_v36  ;;  %v807_v41 = vmax.f32 %v769_v33, 0.0 }
 0x205   : > { %v810_v40 = vmax.f32 %v780_v35, 0.0 }
 0x206   : > { %v808_v42 = vmax.f32 %v772_v37, 0.0 }
 0x207   : > { %v820_v43 = vpack.c.bf16 %v810_v40, %v809_v39 }
 0x208   : > { %v819_v44 = vpack.c.bf16 %v808_v42, %v807_v41 }
 0x20a   : > { %1255 = vmatprep.mubr.msk.bf16.mxu1 %vm677_vm0, %v819_v44 }
 0x20b   : > { %1256 = vmatmul.mubr.msk.bf16.gmra.mrb[24].mxu1 %vm677_vm0, %v820_v43 }
 0x210   : > { %v1237_v45 = vpop.f32.mrb[12].mxu1 }
 0x211   : > { %v793_v46 = vadd.f32 %v1237_v45, %v1098_v38  ;;  %v784_v47 = vpop.f32.mrb[13].mxu1 }
 0x212   : > { %v785_v48 = vadd.f32 %v1098_v38, %v784_v47  ;;  %v1238_v49 = vpop.f32.mrb[14].mxu1 }
 0x213   : > { %v796_v50 = vadd.f32 %v1238_v49, %v1098_v38  ;;  %v787_v51 = vpop.f32.mrb[15].mxu1  ;;  %v813_v53 = vmax.f32 %v793_v46, 0.0 }
 0x214   : > { %v788_v52 = vadd.f32 %v1098_v38, %v787_v51  ;;  %v811_v55 = vmax.f32 %v785_v48, 0.0 }
 0x215   : > { %v814_v54 = vmax.f32 %v796_v50, 0.0 }
 0x216   : > { %v812_v56 = vmax.f32 %v788_v52, 0.0 }
 0x217   : > { %v822_v57 = vpack.c.bf16 %v814_v54, %v813_v53 }
 0x218   : > { %v821_v58 = vpack.c.bf16 %v812_v56, %v811_v55 }
 0x21a   : > { %1259 = vmatprep.mubr.msk.bf16.mxu1 %vm677_vm0, %v821_v58 }
 0x21b   : > { %1260 = vmatmul.mubr.msk.bf16.gmra.mrb[28].mxu1 %vm677_vm0, %v822_v57 }
 0x2be   : > { %v1249_v60 = vpop.f32.mrb[16].mxu1 }
 0x2bf   : > { %v929_v61 = vadd.f32 %v1249_v60, %v1111_v59  ;;  %v920_v62 = vpop.f32.mrb[17].mxu1 }
 0x2c0   : > { %v921_v63 = vadd.f32 %v1111_v59, %v920_v62  ;;  %v1250_v0 = vpop.f32.mrb[18].mxu1 }
 0x2c1   : > { %985 = vst [vmem:[%s1521_s25 + $0x10] sm:$0xff] %v929_v61  ;;  %v932_v1 = vadd.f32 %v1250_v0, %v1111_v59  ;;  %v923_v38 = vpop.f32.mrb[19].mxu1 }
 0x2c2   : > { %983 = vst [vmem:[%s1521_s25] sm:$0xff] %v921_v63  ;;  %v924_v2 = vadd.f32 %v1111_v59, %v923_v38 }
 0x2c3   : > { %986 = vst [vmem:[%s1521_s25 + $0x18] sm:$0xff] %v932_v1 }
 0x2c4   : > { %984 = vst [vmem:[%s1521_s25 + $0x8] sm:$0xff] %v924_v2 }
 0x2ce   : > { %v1253_v3 = vpop.f32.mrb[20].mxu1 }
 0x2cf   : > { %v945_v4 = vadd.f32 %v1253_v3, %v1111_v59  ;;  %v936_v5 = vpop.f32.mrb[21].mxu1 }
 0x2d0   : > { %v937_v6 = vadd.f32 %v1111_v59, %v936_v5  ;;  %v1254_v7 = vpop.f32.mrb[22].mxu1 }
 0x2d1   : > { %989 = vst [vmem:[%s1521_s25 + $0x30] sm:$0xff] %v945_v4  ;;  %v948_v8 = vadd.f32 %v1254_v7, %v1111_v59  ;;  %v939_v9 = vpop.f32.mrb[23].mxu1 }
 0x2d2   : > { %987 = vst [vmem:[%s1521_s25 + $0x20] sm:$0xff] %v937_v6  ;;  %v940_v10 = vadd.f32 %v1111_v59, %v939_v9 }
 0x2d3   : > { %990 = vst [vmem:[%s1521_s25 + $0x38] sm:$0xff] %v948_v8 }
 0x2d4   : > { %988 = vst [vmem:[%s1521_s25 + $0x28] sm:$0xff] %v940_v10 }
 0x2de   : > { %v1257_v11 = vpop.f32.mrb[24].mxu1 }
 0x2df   : > { %v961_v12 = vadd.f32 %v1257_v11, %v1111_v59  ;;  %v952_v13 = vpop.f32.mrb[25].mxu1 }
 0x2e0   : > { %v953_v14 = vadd.f32 %v1111_v59, %v952_v13  ;;  %v1258_v15 = vpop.f32.mrb[26].mxu1 }
 0x2e1   : > { %993 = vst [vmem:[%s1521_s25 + $0x50] sm:$0xff] %v961_v12  ;;  %v964_v16 = vadd.f32 %v1258_v15, %v1111_v59  ;;  %v955_v17 = vpop.f32.mrb[27].mxu1 }
 0x2e2   : > { %991 = vst [vmem:[%s1521_s25 + $0x40] sm:$0xff] %v953_v14  ;;  %v956_v18 = vadd.f32 %v1111_v59, %v955_v17 }
 0x2e3   : > { %994 = vst [vmem:[%s1521_s25 + $0x58] sm:$0xff] %v964_v16 }
 0x2e4   : > { %992 = vst [vmem:[%s1521_s25 + $0x48] sm:$0xff] %v956_v18 }
 0x2ee   : > { %v1261_v19 = vpop.f32.mrb[28].mxu1 }
 0x2ef   : > { %v977_v20 = vadd.f32 %v1261_v19, %v1111_v59  ;;  %v968_v21 = vpop.f32.mrb[29].mxu1 }
 0x2f0   : > { %v969_v22 = vadd.f32 %v1111_v59, %v968_v21  ;;  %v1262_v23 = vpop.f32.mrb[30].mxu1 }
 0x2f1   : > { %997 = vst [vmem:[%s1521_s25 + $0x70] sm:$0xff] %v977_v20  ;;  %v980_v24 = vadd.f32 %v1262_v23, %v1111_v59  ;;  %v971_v25 = vpop.f32.mrb[31].mxu1 }
 0x2f2   : > { %995 = vst [vmem:[%s1521_s25 + $0x60] sm:$0xff] %v969_v22  ;;  %v972_v26 = vadd.f32 %v1111_v59, %v971_v25 }
 0x2f3   : > { %998 = vst [vmem:[%s1521_s25 + $0x78] sm:$0xff] %v980_v24 }
 0x2f4   : > { %996 = vst [vmem:[%s1521_s25 + $0x68] sm:$0xff] %v972_v26 }
 0x2f5 PF: > { %s17_s24 = sadd.s32 1, %s1325_s24  }
 0x2f6   : > { %p14_p4 = scmp.ge.s32.totalorder %s17_s24, 4  }
 0x2f8   :  { %16 = sbr.rel (!%p14_p4) target bundleno = 1 (0x1), region = 78 }

</bundles_post_ra>
